<compile_context>
chip_gen: v5e
topology: v5e:2x2
jax: 0.10.0
libtpu: 0.0.40
codegen_flags: <defaults>
</compile_context>

<pallas_src>
import functools
import math

import jax
import jax.numpy as jnp
from jax.experimental import pallas as pl
from jax.experimental.pallas import tpu as pltpu


def _round_up(x, m):
    return ((x + m - 1) // m) * m


def _mdn_kernel(x_ref,              # VMEM f32[TILE_M, H]
                w_ref,              # VMEM bf16[H, N_pad]   (pi|mu|sigma, zero padded)
                b_ref,              # VMEM f32[1, N_pad]
                out_ref,            # VMEM f32[TILE_M, N_pad]
                *, g, gd, inv_tau, sqrt_tau):
    # One wide MXU matmul for all three heads; in-kernel bf16 cast of x (VPU
    # slot has slack in this DMA-bound regime), f32 accumulation.
    acc = jnp.dot(x_ref[...].astype(jnp.bfloat16), w_ref[...],
                  preferred_element_type=jnp.float32)
    acc = acc + b_ref[...]

    lane = jax.lax.broadcasted_iota(jnp.int32, acc.shape, dimension=1)
    is_pi = lane < g
    is_sg = (lane >= g + gd) & (lane < g + 2 * gd)

    # --- pi logits (scaled by 1/tau), masked to -1e30 outside the pi lanes so
    #     padding cannot corrupt the softmax max/sum.
    pi_logits = jnp.where(is_pi, acc * inv_tau, jnp.float32(-1e30))
    m = jnp.max(pi_logits, axis=-1, keepdims=True)

    # --- single fused exp: pi lanes -> exp(logits - rowmax), sigma lanes ->
    #     exp(acc), everything else -> exp(-1e30) == 0.
    pre = jnp.where(is_pi, pi_logits - m, jnp.where(is_sg, acc, jnp.float32(-1e30)))
    e = jnp.exp(pre)

    denom = jnp.sum(jnp.where(is_pi, e, 0.0), axis=-1, keepdims=True)
    pi_vals = e * pl.reciprocal(denom, approx=True) + 1e-15
    sg_vals = (e + 1e-15) * sqrt_tau

    # mu lanes (and zero-weight padded lanes) pass the raw affine through.
    out_ref[...] = jnp.where(is_pi, pi_vals, jnp.where(is_sg, sg_vals, acc))


def mdn_forward(outs_rnn, tau, params, *, tile_m=2048):
    """outs_rnn: [B, S, H] f32; tau: python float; params: dict of weights [H, out]."""
    B, S, H = outs_rnn.shape
    G = params["w_pi"].shape[1]
    GD = params["w_mu"].shape[1]
    D = GD // G
    N = G + 2 * GD
    N_pad = _round_up(N, 128)          # lane-dense fused output width (keep at 128)

    M = B * S
    # Row tile: big by default (amortize per-step overhead), but
    #   * capped so there are >= 2 row tiles when M allows (v7x megacore),
    #   * rounded to 16 sublanes (bf16 packing),
    #   * never larger than the (rounded) problem.
    half_m = _round_up(max(-(-M // 2), 16), 16)
    tile_m = min(tile_m, half_m, _round_up(M, 16))
    M_pad = _round_up(M, tile_m)
    grid_m = M_pad // tile_m

    # Fuse and pad the three heads: [H, N_pad] bf16 weight, [1, N_pad] f32 bias.
    w_fused = jnp.concatenate(
        [params["w_pi"], params["w_mu"], params["w_sigma"]], axis=1)
    b_fused = jnp.concatenate(
        [params["b_pi"], params["b_mu"], params["b_sigma"]], axis=1)
    w_fused = jnp.pad(w_fused, ((0, 0), (0, N_pad - N))).astype(jnp.bfloat16)
    b_fused = jnp.pad(b_fused, ((0, 0), (0, N_pad - N))).astype(jnp.float32)

    # Row-major flatten; pad rows only if the tile does not divide M.  x stays
    # f32 -- the bf16 cast happens inside the kernel.
    x = outs_rnn.reshape(M, H)
    if M_pad != M:
        x = jnp.pad(x, ((0, M_pad - M), (0, 0)))
    x = x.astype(jnp.float32)

    tau_f = float(tau)
    kernel = functools.partial(
        _mdn_kernel, g=G, gd=GD,
        inv_tau=1.0 / tau_f, sqrt_tau=math.sqrt(tau_f))

    cost = pl.CostEstimate(
        flops=2 * M_pad * H * N_pad,
        transcendentals=M_pad * N_pad,                 # single fused exp
        bytes_accessed=(x.size * 4 + w_fused.size * 2 + b_fused.size * 4
                        + M_pad * N_pad * 4),
    )

    out = pl.pallas_call(
        kernel,
        out_shape=jax.ShapeDtypeStruct((M_pad, N_pad), jnp.float32),
        grid=(grid_m,),
        in_specs=[
            pl.BlockSpec((tile_m, H), lambda i: (i, 0)),        # x row-tile (f32)
            pl.BlockSpec((H, N_pad), lambda i: (0, 0)),         # resident fused W
            pl.BlockSpec((1, N_pad), lambda i: (0, 0)),         # resident fused b
        ],
        out_specs=pl.BlockSpec((tile_m, N_pad), lambda i: (i, 0)),
        compiler_params=pltpu.CompilerParams(
            dimension_semantics=("parallel",)),
        cost_estimate=cost,
    )(x, w_fused, b_fused)

    pi = out[:M, :G].reshape(B, S, G)
    mu = out[:M, G:G + GD].reshape(B, S, G, D)
    sigma = out[:M, G + GD:G + 2 * GD].reshape(B, S, G, D)
    return pi, mu, sigma


def init_mdn_params(key, latent_dim, hidden_dim, num_gaussians):
    """Deterministic init mimicking nn.Linear's uniform(-1/sqrt(H), 1/sqrt(H))."""
    ks = jax.random.split(key, 6)
    bound = 1.0 / jnp.sqrt(jnp.float32(hidden_dim))
    G, D, H = num_gaussians, latent_dim, hidden_dim

    def u(k, shape):
        return jax.random.uniform(k, shape, jnp.float32, -bound, bound)

    return {
        # stored as [H, out] (already transposed vs. nn.Linear)
        "w_pi":    u(ks[0], (H, G)),
        "b_pi":    u(ks[1], (1, G)),
        "w_mu":    u(ks[2], (H, G * D)),
        "b_mu":    u(ks[3], (1, G * D)),
        "w_sigma": u(ks[4], (H, G * D)),
        "b_sigma": u(ks[5], (1, G * D)),
    }


if __name__ == "__main__":
    B, S, H = 2, 8, 32        # batch, seq_len, hidden_dim
    G, D = 4, 8               # num_gaussians, latent_dim
    tau = 0.7

    key = jax.random.PRNGKey(0)
    k_x, k_p = jax.random.split(key)
    outs_rnn = jax.random.normal(k_x, (B, S, H), dtype=jnp.float32)
    params = init_mdn_params(k_p, latent_dim=D, hidden_dim=H, num_gaussians=G)

    pi, mu, sigma = mdn_forward(outs_rnn, tau, params)
    jax.block_until_ready((pi, mu, sigma))

    assert pi.shape == (B, S, G)
    assert mu.shape == (B, S, G, D)
    assert sigma.shape == (B, S, G, D)

    # Sanity check vs. pure-JAX reference using the same bf16-rounded matmul
    # inputs (the kernel runs the matmul in bf16 with f32 accumulation).
    x_f = outs_rnn.reshape(B * S, H)
    xb = x_f.astype(jnp.bfloat16).astype(jnp.float32)
    wpi = params["w_pi"].astype(jnp.bfloat16).astype(jnp.float32)
    wmu = params["w_mu"].astype(jnp.bfloat16).astype(jnp.float32)
    wsg = params["w_sigma"].astype(jnp.bfloat16).astype(jnp.float32)

    pi_ref = jax.nn.softmax((xb @ wpi + params["b_pi"]) / tau, axis=-1) + 1e-15
    mu_ref = (xb @ wmu + params["b_mu"]).reshape(B, S, G, D)
    sg_ref = ((jnp.exp(xb @ wsg + params["b_sigma"]) + 1e-15)
              * jnp.sqrt(jnp.float32(tau))).reshape(B, S, G, D)

    assert jnp.allclose(pi, pi_ref.reshape(B, S, G), rtol=5e-3, atol=5e-3)
    assert jnp.allclose(mu, mu_ref, rtol=5e-3, atol=5e-3)
    assert jnp.allclose(sigma, sg_ref, rtol=5e-3, atol=5e-3)

    print("KERNEL_OK")
</pallas_src>

<mosaic_0001>
module attributes {stable_mosaic.version = 11 : i64} {
  func.func @_mdn_kernel(%arg0: i32, %arg1: memref<16x32xf32, #tpu.memory_space<vmem>>, %arg2: memref<32x128xbf16, #tpu.memory_space<vmem>>, %arg3: memref<1x128xf32, #tpu.memory_space<vmem>>, %arg4: memref<16x128xf32, #tpu.memory_space<vmem>>) attributes {dimension_semantics = [#tpu.dimension_semantics<parallel>], iteration_bounds = array<i64: 1>, scalar_prefetch = 0 : i64, scratch_operands = 0 : i64, tpu.core_type = #tpu.core_type<tc>, window_params = [{transform_indices = @transform_0, window_bounds = array<i64: 16, 32>}, {pipeline_mode = #tpu.pipeline_mode<synchronous>, transform_indices = @transform_1, window_bounds = array<i64: 32, 128>}, {pipeline_mode = #tpu.pipeline_mode<synchronous>, transform_indices = @transform_2, window_bounds = array<i64: 1, 128>}, {transform_indices = @transform_3, window_bounds = array<i64: 16, 128>}]} {
    %c0 = arith.constant 0 : index
    %c0_0 = arith.constant 0 : index
    %0 = vector.load %arg1[%c0, %c0_0] : memref<16x32xf32, #tpu.memory_space<vmem>>, vector<16x32xf32>
    %1 = arith.truncf %0 : vector<16x32xf32> to vector<16x32xbf16>
    %c0_1 = arith.constant 0 : index
    %c0_2 = arith.constant 0 : index
    %2 = vector.load %arg2[%c0_1, %c0_2] : memref<32x128xbf16, #tpu.memory_space<vmem>>, vector<32x128xbf16>
    %cst = arith.constant dense<0.000000e+00> : vector<16x128xf32>
    %3 = tpu.matmul %1, %2, %cst {dimension_numbers = #tpu.dot_dimension_numbers<[1], [0], [0], [1], [0, 0, 1, 1], [], []>} : vector<16x32xbf16>, vector<32x128xbf16>, vector<16x128xf32> -> vector<16x128xf32>
    %c0_3 = arith.constant 0 : index
    %c0_4 = arith.constant 0 : index
    %4 = vector.load %arg3[%c0_3, %c0_4] : memref<1x128xf32, #tpu.memory_space<vmem>>, vector<1x128xf32>
    %5 = vector.broadcast %4 : vector<1x128xf32> to vector<16x128xf32>
    %6 = arith.addf %3, %5 : vector<16x128xf32>
    %7 = tpu.iota {dimensions = array<i32: 1>} : vector<16x128xi32>
    %c4_i32 = arith.constant 4 : i32
    %8 = vector.broadcast %c4_i32 : i32 to vector<16x128xi32>
    %9 = arith.cmpi slt, %7, %8 : vector<16x128xi32>
    %c36_i32 = arith.constant 36 : i32
    %10 = vector.broadcast %c36_i32 : i32 to vector<16x128xi32>
    %11 = arith.cmpi sge, %7, %10 : vector<16x128xi32>
    %c68_i32 = arith.constant 68 : i32
    %12 = vector.broadcast %c68_i32 : i32 to vector<16x128xi32>
    %13 = arith.cmpi slt, %7, %12 : vector<16x128xi32>
    %14 = arith.andi %11, %13 : vector<16x128xi1>
    %cst_5 = arith.constant 1.42857146 : f32
    %15 = vector.broadcast %cst_5 : f32 to vector<16x128xf32>
    %16 = arith.mulf %6, %15 : vector<16x128xf32>
    %cst_6 = arith.constant -1.000000e+30 : f32
    %17 = vector.broadcast %cst_6 : f32 to vector<16x128xf32>
    %18 = arith.select %9, %16, %17 : vector<16x128xi1>, vector<16x128xf32>
    %cst_7 = arith.constant dense<0xFF800000> : vector<16xf32>
    %19 = vector.multi_reduction <maximumf>, %18, %cst_7 [1] : vector<16x128xf32> to vector<16xf32>
    %20 = vector.shape_cast %19 : vector<16xf32> to vector<16x1xf32>
    %21 = vector.broadcast %20 : vector<16x1xf32> to vector<16x128xf32>
    %22 = arith.subf %18, %21 : vector<16x128xf32>
    %cst_8 = arith.constant -1.000000e+30 : f32
    %23 = vector.broadcast %cst_8 : f32 to vector<16x128xf32>
    %24 = arith.select %14, %6, %23 : vector<16x128xi1>, vector<16x128xf32>
    %25 = arith.select %9, %22, %24 : vector<16x128xi1>, vector<16x128xf32>
    %26 = math.exp %25 : vector<16x128xf32>
    %cst_9 = arith.constant 0.000000e+00 : f32
    %27 = vector.broadcast %cst_9 : f32 to vector<16x128xf32>
    %28 = arith.select %9, %26, %27 : vector<16x128xi1>, vector<16x128xf32>
    %cst_10 = arith.constant dense<0.000000e+00> : vector<16xf32>
    %29 = vector.multi_reduction <add>, %28, %cst_10 [1] : vector<16x128xf32> to vector<16xf32>
    %30 = vector.shape_cast %29 : vector<16xf32> to vector<16x1xf32>
    %31 = tpu.reciprocal %30 {approx = true} : vector<16x1xf32> -> vector<16x1xf32>
    %32 = vector.broadcast %31 : vector<16x1xf32> to vector<16x128xf32>
    %33 = arith.mulf %26, %32 : vector<16x128xf32>
    %cst_11 = arith.constant 1.000000e-15 : f32
    %34 = vector.broadcast %cst_11 : f32 to vector<16x128xf32>
    %35 = arith.addf %33, %34 : vector<16x128xf32>
    %cst_12 = arith.constant 1.000000e-15 : f32
    %36 = vector.broadcast %cst_12 : f32 to vector<16x128xf32>
    %37 = arith.addf %26, %36 : vector<16x128xf32>
    %cst_13 = arith.constant 8.366600e-01 : f32
    %38 = vector.broadcast %cst_13 : f32 to vector<16x128xf32>
    %39 = arith.mulf %37, %38 : vector<16x128xf32>
    %40 = arith.select %14, %39, %6 : vector<16x128xi1>, vector<16x128xf32>
    %41 = arith.select %9, %35, %40 : vector<16x128xi1>, vector<16x128xf32>
    %c0_14 = arith.constant 0 : index
    %c0_15 = arith.constant 0 : index
    %42 = vector.load %arg4[%c0_14, %c0_15] : memref<16x128xf32, #tpu.memory_space<vmem>>, vector<16x128xf32>
    tpu.vector_store %arg4[%c0_14, %c0_15], %41 {strides = array<i32>} : memref<16x128xf32, #tpu.memory_space<vmem>>, vector<16x128xf32>,
    return
  }
  func.func @transform_0(%arg0: i32) -> (i32, i32) {
    %c0_i32 = arith.constant 0 : i32
    %c0_i32_0 = arith.constant 0 : i32
    return %arg0, %c0_i32 : i32, i32
  }
  func.func @transform_1(%arg0: i32) -> (i32, i32) {
    %c0_i32 = arith.constant 0 : i32
    %c0_i32_0 = arith.constant 0 : i32
    %c0_i32_1 = arith.constant 0 : i32
    return %c0_i32, %c0_i32_0 : i32, i32
  }
  func.func @transform_2(%arg0: i32) -> (i32, i32) {
    %c0_i32 = arith.constant 0 : i32
    %c0_i32_0 = arith.constant 0 : i32
    %c0_i32_1 = arith.constant 0 : i32
    return %c0_i32, %c0_i32_0 : i32, i32
  }
  func.func @transform_3(%arg0: i32) -> (i32, i32) {
    %c0_i32 = arith.constant 0 : i32
    %c0_i32_0 = arith.constant 0 : i32
    return %arg0, %c0_i32 : i32, i32
  }
}

</mosaic_0001>

<bundles_post_ra>
// kernel: tpu_custom_call.1
= control target key start
LH: loop header
LB: loop body
LE: loop exit
PB: predicated region body
PF: predicated region fallthrough
CT: control target
= control target key end

     0   :  { %8 = vsyncpa [#allocation3], 0  ;;  %s325_s0 = inlined_call_operand.hbm [shape: f32[16,32], index: 0, kind: input, shape index: {}]   ;;  %s326_s1 = inlined_call_operand.hbm [shape: bf16[32,128], index: 1, kind: input, shape index: {}]   ;;  %s327_s2 = inlined_call_operand.vmem [shape: f32[1,128], index: 2, kind: input, shape index: {}]   ;;  %s328_s3 = inlined_call_operand.hbm [shape: f32[16,128], index: 3, kind: output, shape index: {}]  }
   0x1   :  { %9 = vsyncpa [#allocation6], 0 }
   0x2   :  { %10 = vsyncpa [#allocation4], 0  ;;  %s15_s14 = sshll.u32 %s325_s0, 4  ;;  %s260_s15 = smov [#allocation2]   ;;  %s16_s14 = int_to_ptr.hbm [resolvable:$true] %s15_s14 }
   0x3   :  { %s17_s16 = sshll.u32 %s260_s15, 4  ;;  %s28_s19 = sshll.u32 %s326_s1, 4  ;;  %s18_s16 = int_to_ptr.vmem [resolvable:$true] %s17_s16  ;;  %s29_s19 = int_to_ptr.hbm [resolvable:$true] %s28_s19 }
   0x4   :  { %s261_s20 = smov 128   ;;  %s262_s21 = smov 8  }
   0x5   :  { %23 = dma.hbm_to_vmem [thread:$0]  %s16_s14, 256, %s18_s16, [#allocation3], %s261_s20, %s261_s20, %s262_s21  }
   0x6   :  { %s263_s22 = smov [#allocation5]   ;;  %s264_s24 = smov 64  }
   0x7   :  { %s30_s23 = sshll.u32 %s263_s22, 4  ;;  %s265_s0 = smov 4   ;;  %s31_s23 = int_to_ptr.vmem [resolvable:$true] %s30_s23 }
   0x8   :  { %36 = dma.hbm_to_vmem [thread:$0]  %s29_s19, 256, %s31_s23, [#allocation6], %s264_s24, %s264_s24, %s265_s0  }
   0x9   :  { %254 = dma.done.wait [#allocation3], 256  }
   0xa   :  { %255 = vsyncadd [#allocation3], 4294967040 }
   0xb   :  { %256 = dma.done.wait [#allocation6], 256  }
   0xc   :  { %257 = vsyncadd [#allocation6], 4294967040  ;;  %v165_v0 = vld [vmem:[#allocation5 + $0x8] sm:$0xff]  ;;  %v164_v1 = vld [vmem:[#allocation5] sm:$0xff]  ;;  %vm71_vm0 = vcmask 261120   ;;  %v89_v5 = vlaneseq  ;;  %s141_s29 = sshll.u32 %s328_s3, 4  ;;  %s142_s29 = int_to_ptr.hbm [resolvable:$true] %s141_s29 }
   0xd   :  { %81 = vmatpush.bf16.msra.mxu0 %v165_v0  ;;  %v48_v2 = vld [vmem:[#allocation2] sm:$0xff]  ;;  %v49_v3 = vld [vmem:[#allocation2 + $0x8] sm:$0xff] }
   0xe   :  { %v50_v4 = vpack.c.bf16 %v49_v3, %v48_v2  ;;  %v173_v6 = vld [vmem:[%s327_s2] ss:$0 sm:$0xff]  ;;  %v90_v8 = vand.u32 127, %v89_v5  ;;  %s266_s2 = smov [#allocation7]  }
   0xf   :  { %s139_s26 = sshll.u32 %s266_s2, 4  ;;  %s140_s26 = int_to_ptr.vmem [resolvable:$true] %s139_s26 }
  0x10   :  { %vm91_vm1 = vcmp.lt.s32.totalorder %v90_v8, 4  ;;  %vm92_vm2 = vcmp.ge.s32.totalorder %v90_v8, 36  ;;  %vm93_vm3 = vcmp.lt.s32.totalorder %v90_v8, 68 }
  0x11   :  { %82 = vmatpush.bf16.msra.mxu0 %v164_v1  ;;  %vm301_vm4 = vmand %vm92_vm2, %vm93_vm3 }
  0x14   :  { %163 = vmatmul.msk.bf16.vlgmr.msra.gmra.mxu0 %vm71_vm0, %v50_v4 }
  0x91   :  { %v84_v7 = vpop.f32.mrf.mxu0 }
  0x92   :  { %v85_v9 = vadd.f32 %v173_v6, %v84_v7 }
  0x94   :  { %v95_v10 = vmul.f32 1.4285715, %v85_v9  ;;  %v105_v19 = vsel %vm301_vm4, %v85_v9, -1e+30 }
  0x96   :  { %v97_v11 = vsel %vm91_vm1, %v95_v10, -1e+30 }
  0x97   :  { %99 = vmax.xlane.f32.xlu0 %v97_v11 }
  0x99   :  { %v86_v12 = vpop.f32.mrf.mxu0 }
  0x9a   :  { %v87_v13 = vadd.f32 %v173_v6, %v86_v12 }
  0x9c   :  { %v96_v14 = vmul.f32 1.4285715, %v87_v13  ;;  %v106_v24 = vsel %vm301_vm4, %v87_v13, -1e+30 }
  0x9e   :  { %v98_v15 = vsel %vm91_vm1, %v96_v14, -1e+30 }
  0x9f   :  { %101 = vmax.xlane.f32.xlu0 %v98_v15 }
 0x10a   :  { %v100_v17 = vpop.xlane.xlu0 %99 }
 0x10b   :  { %v103_v18 = vsub.f32 %v97_v11, %v100_v17 }
 0x10d   :  { %v107_v20 = vsel %vm91_vm1, %v103_v18, %v105_v19 }
 0x10e   :  { %v109_v21 = vmul.f32 1.442695, %v107_v20 }
 0x110   :  { %174 = vpow2.f32 %v109_v21 }
 0x112   :  { %v102_v22 = vpop.xlane.xlu0 %101 }
 0x113   :  { %v104_v23 = vsub.f32 %v98_v15, %v102_v22 }
 0x115   :  { %v108_v25 = vsel %vm91_vm1, %v104_v23, %v106_v24 }
 0x116   :  { %v175_v26 = vpop.eup %174  ;;  %v111_v27 = vmul.f32 1.442695, %v108_v25 }
 0x117   :  { %v113_v28 = vsel %vm91_vm1, %v175_v26, 0.0  ;;  %v125_v32 = vadd.f32 1e-15, %v175_v26 }
 0x118   :  { %176 = vpow2.f32 %v111_v27  ;;  %115 = vadd.xlane.f32.xlu1 %v113_v28 }
 0x119   :  { %v127_v34 = vmul.f32 0.83666, %v125_v32 }
 0x11b   :  { %v129_v39 = vsel %vm301_vm4, %v127_v34, %v85_v9 }
 0x11e   :  { %v177_v29 = vpop.eup %176 }
 0x11f   :  { %v114_v30 = vsel %vm91_vm1, %v177_v29, 0.0  ;;  %v126_v38 = vadd.f32 1e-15, %v177_v29 }
 0x120   :  { %117 = vadd.xlane.f32.xlu1 %v114_v30 }
 0x121   :  { %v128_v42 = vmul.f32 0.83666, %v126_v38 }
 0x123   :  { %v130_v45 = vsel %vm301_vm4, %v128_v42, %v87_v13 }
 0x18b   :  { %v116_v31 = vpop.xlane.xlu1 %115 }
 0x18c   :  { %178 = vrcp.f32 %v116_v31 }
 0x192   :  { %v179_v33 = vpop.eup %178 }
 0x193   :  { %v121_v35 = vmul.f32 %v179_v33, %v175_v26  ;;  %v118_v36 = vpop.xlane.xlu1 %117 }
 0x194   :  { %180 = vrcp.f32 %v118_v36 }
 0x195   :  { %v123_v37 = vadd.f32 1e-15, %v121_v35 }
 0x197   :  { %v131_v40 = vsel %vm91_vm1, %v123_v37, %v129_v39 }
 0x198   :  { %133 = vst [vmem:[#allocation7] sm:$0xff] %v131_v40 }
 0x19a   :  { %v181_v41 = vpop.eup %180 }
 0x19b   :  { %v122_v43 = vmul.f32 %v181_v41, %v177_v29 }
 0x19d   :  { %v124_v44 = vadd.f32 1e-15, %v122_v43 }
 0x19f   :  { %v132_v46 = vsel %vm91_vm1, %v124_v44, %v130_v45 }
 0x1a0   :  { %134 = vst [vmem:[#allocation7 + $0x8] sm:$0xff] %v132_v46 }
 0x1a1   :  { %147 = dma.vmem_to_hbm [thread:$0]  %s140_s26, 256, %s142_s29, [#allocation4], %s261_s20, %s261_s20, %s262_s21  }
 0x1a2   :  { %258 = dma.done.wait [#allocation4], 256  }
 0x1a3   :  { %259 = vsyncadd [#allocation4], 4294967040 }
 0x1a4   :  { %152 = vsyncpa [#allocation3], 1 }
 0x1a5   :  { %153 = vsyncpa [#allocation6], 1 }
 0x1a6   :  { %154 = vsyncpa [#allocation4], 1 }

</bundles_post_ra>
